<compile_context>
chip_gen: v7x
topology: tpu7x:2x2x1
jax: 0.10.0
libtpu: 0.0.40
codegen_flags: <defaults>
</compile_context>

<pallas_src>
import functools

import jax
import jax.numpy as jnp
from jax.experimental import pallas as pl
from jax.experimental.pallas import tpu as pltpu

LANE = 128  # lane-dense output width (tiny class/domain dims are padded up)


# ----------------------------------------------------------------------------
# Fused Pallas kernel: feature matmul + ReLU -> segm head -> pooled-sum/domain
# ----------------------------------------------------------------------------
def _dann_fused_kernel(p_ref, wf_ref, bf_ref, ws_ref, bs_ref, wd_ref, bd_ref,
                       segm_ref, dom_ref, pool_acc, *, inv_hw):
    """One grid step = one (batch, row-tile) block of im2col patches."""
    r = pl.program_id(1)

    @pl.when(r == 0)
    def _init():
        pool_acc[...] = jnp.zeros_like(pool_acc)

    # feature extractor: bf16 MXU matmul, f32 accumulate, f32 bias + ReLU.
    patches = p_ref[0]                                            # (tq, 9C) bf16
    feats = jnp.dot(patches, wf_ref[...],
                    preferred_element_type=jnp.float32)
    feats = jnp.maximum(feats + bf_ref[...], 0.0)                 # (tq, hidden) f32

    # segmentation 1x1 head -> lane-dense padded output (tq, LANE).
    segm = jnp.dot(feats.astype(ws_ref.dtype), ws_ref[...],
                   preferred_element_type=jnp.float32) + bs_ref[...]
    segm_ref[0] = segm.astype(segm_ref.dtype)

    # accumulate pooled feature sum for the domain head (per batch element).
    pool_acc[...] += jnp.sum(feats, axis=0, keepdims=True)        # (1, hidden) f32

    @pl.when(r == pl.num_programs(1) - 1)
    def _finalize():
        pooled = pool_acc[...] * inv_hw                           # global avg pool
        dom = jnp.dot(pooled, wd_ref[...],
                      preferred_element_type=jnp.float32) + bd_ref[...]
        dom_ref[0] = dom.astype(dom_ref.dtype)                    # (1, LANE)


def dann_fused(patches, w_feat, b_feat, w_segm_pad, b_segm_pad,
               w_dom_pad, b_dom_pad, *, row_tile=128):
    """patches: (N, H*W, 9*C) bf16.

    Returns (segm_pad: (N, H*W, LANE) f32, dom_pad: (N, 1, LANE) f32).
    """
    N, HW, K = patches.shape
    Hd = w_feat.shape[1]
    L = w_segm_pad.shape[1]
    # No hard divisibility assert: fall back to the full row extent (it fits
    # VMEM comfortably at these sizes and avoids per-step launch overhead).
    if row_tile is None or HW % row_tile != 0:
        row_tile = HW
    R = HW // row_tile
    # TODO(synk): for scaled-up hidden/K on v7x (64 MiB VMEM), add a K-tiled
    # accumulator variant instead of loading the full (K, hidden) weight block.

    kernel = functools.partial(_dann_fused_kernel, inv_hw=1.0 / HW)
    return pl.pallas_call(
        kernel,
        out_shape=(
            jax.ShapeDtypeStruct((N, HW, L), jnp.float32),
            jax.ShapeDtypeStruct((N, 1, L), jnp.float32),
        ),
        grid_spec=pltpu.PrefetchScalarGridSpec(
            num_scalar_prefetch=0,
            grid=(N, R),
            in_specs=[
                pl.BlockSpec((1, row_tile, K), lambda i, r: (i, r, 0)),
                pl.BlockSpec((K, Hd), lambda i, r: (0, 0)),
                pl.BlockSpec((1, Hd), lambda i, r: (0, 0)),
                pl.BlockSpec((Hd, L), lambda i, r: (0, 0)),
                pl.BlockSpec((1, L), lambda i, r: (0, 0)),
                pl.BlockSpec((Hd, L), lambda i, r: (0, 0)),
                pl.BlockSpec((1, L), lambda i, r: (0, 0)),
            ],
            out_specs=(
                pl.BlockSpec((1, row_tile, L), lambda i, r: (i, r, 0)),
                pl.BlockSpec((1, 1, L), lambda i, r: (i, 0, 0)),
            ),
            scratch_shapes=[pltpu.VMEM((1, Hd), jnp.float32)],
        ),
        compiler_params=pltpu.CompilerParams(
            dimension_semantics=("parallel", "arbitrary")),
    )(patches, w_feat, b_feat, w_segm_pad, b_segm_pad, w_dom_pad, b_dom_pad)


# ----------------------------------------------------------------------------
# Glue: im2col for the 3x3 conv (pad=1, stride=1)
# ----------------------------------------------------------------------------
# TODO(synk): at real image sizes, do the 3x3 halo gather inside the kernel
# (shifted matmuls over a resident NHWC tile) instead of materializing a
# 9x-inflated im2col tensor in HBM. At 16x16 it is negligible.
def im2col_3x3(x_nhwc):
    N, H, W, C = x_nhwc.shape
    xp = jnp.pad(x_nhwc, ((0, 0), (1, 1), (1, 1), (0, 0)))
    patches = [
        xp[:, dh: dh + H, dw: dw + W, :] for dh in range(3) for dw in range(3)
    ]
    return jnp.concatenate(patches, axis=-1)  # (N, H, W, 9*C)


# ----------------------------------------------------------------------------
# Synthetic DANN architecture:  x -> (segm_logits_NCHW, domain_logits)
# ----------------------------------------------------------------------------
class DannArchitecture:
    def __init__(self, key, in_ch=4, hidden=32, num_classes=3, num_domains=2):
        k1, k2, k3, k4, k5, k6 = jax.random.split(key, 6)
        self.in_ch, self.hidden = in_ch, hidden
        self.num_classes, self.num_domains = num_classes, num_domains

        # feature extractor: 3x3 conv (in_ch -> hidden) as im2col matmul.
        # Weights stored bf16 for the MXU; accumulation stays f32 in-kernel.
        self.w_feat = (0.1 * jax.random.normal(
            k1, (9 * in_ch, hidden), jnp.float32)).astype(jnp.bfloat16)
        self.b_feat = 0.1 * jax.random.normal(k4, (1, hidden), jnp.float32)

        # segmentation head: 1x1 conv (hidden -> num_classes), lane-padded to
        # LANE so the kernel writes full unmasked 128-wide stores.
        w_segm = 0.1 * jax.random.normal(k2, (hidden, num_classes), jnp.float32)
        b_segm = 0.1 * jax.random.normal(k5, (1, num_classes), jnp.float32)
        self.w_segm, self.b_segm = w_segm, b_segm
        self.w_segm_pad = (jnp.zeros((hidden, LANE), jnp.float32)
                           .at[:, :num_classes].set(w_segm)).astype(jnp.bfloat16)
        self.b_segm_pad = (jnp.zeros((1, LANE), jnp.float32)
                           .at[:, :num_classes].set(b_segm))

        # domain classifier: GAP + linear (hidden -> num_domains), kept f32
        # (negligible cost, avoids compounding bf16 error on the tiny head).
        # TODO(synk): gradient-reversal layer is identity at inference; omitted.
        w_dom = 0.1 * jax.random.normal(k3, (hidden, num_domains), jnp.float32)
        b_dom = 0.1 * jax.random.normal(k6, (1, num_domains), jnp.float32)
        self.w_dom, self.b_dom = w_dom, b_dom
        self.w_dom_pad = (jnp.zeros((hidden, LANE), jnp.float32)
                          .at[:, :num_domains].set(w_dom))
        self.b_dom_pad = (jnp.zeros((1, LANE), jnp.float32)
                          .at[:, :num_domains].set(b_dom))

    def __call__(self, x_nchw):
        N, C, H, W = x_nchw.shape
        # NCHW -> NHWC glue (PyTorch-facing interface stays NCHW).
        # TODO(synk): keep NHWC end-to-end at real sizes to drop these passes.
        x_nhwc = jnp.transpose(x_nchw, (0, 2, 3, 1))
        patches = im2col_3x3(x_nhwc).reshape(N, H * W, 9 * C).astype(jnp.bfloat16)

        segm_pad, dom_pad = dann_fused(
            patches, self.w_feat, self.b_feat,
            self.w_segm_pad, self.b_segm_pad,
            self.w_dom_pad, self.b_dom_pad)

        segm = jnp.transpose(
            segm_pad[:, :, :self.num_classes].reshape(N, H, W, self.num_classes),
            (0, 3, 1, 2))                                   # back to NCHW
        dom = dom_pad[:, 0, :self.num_domains]              # (N, num_domains)
        return segm, dom


class InferenceWrapper:
    """Faithful port of the PyTorch InferenceWrapper forward."""

    def __init__(self, architecture, mode: str = "segm"):
        if mode not in ("segm", "domain"):
            raise ValueError(f"Inference mode must be 'segm' or 'domain', got {mode}")
        self.architecture = architecture
        self.mode = mode

    def __call__(self, x):
        outs = self.architecture(x)
        return outs[0] if self.mode == "segm" else outs[1]


# ----------------------------------------------------------------------------
# Pure-JAX reference (mirrors the kernel's bf16-input / f32-accumulate math)
# ----------------------------------------------------------------------------
def reference_forward(arch, x_nchw):
    N, C, H, W = x_nchw.shape
    x_nhwc = jnp.transpose(x_nchw, (0, 2, 3, 1))
    patches = im2col_3x3(x_nhwc).reshape(N * H * W, 9 * C).astype(jnp.bfloat16)
    feats = jnp.dot(patches, arch.w_feat, preferred_element_type=jnp.float32)
    feats = jnp.maximum(feats + arch.b_feat, 0.0)
    segm_flat = (jnp.dot(feats.astype(jnp.bfloat16),
                         arch.w_segm.astype(jnp.bfloat16),
                         preferred_element_type=jnp.float32) + arch.b_segm)
    segm = jnp.transpose(
        segm_flat.reshape(N, H, W, arch.num_classes), (0, 3, 1, 2))
    pooled = jnp.mean(feats.reshape(N, H * W, arch.hidden), axis=1)
    dom = jnp.dot(pooled, arch.w_dom,
                  preferred_element_type=jnp.float32) + arch.b_dom
    return segm, dom


if __name__ == "__main__":
    key = jax.random.PRNGKey(0)
    k_param, k_x = jax.random.split(key)

    N, C, H, W = 2, 4, 16, 16
    x = jax.random.normal(k_x, (N, C, H, W), jnp.float32)

    arch = DannArchitecture(k_param, in_ch=C, hidden=32, num_classes=3, num_domains=2)

    segm_out = InferenceWrapper(arch, mode="segm")(x)
    dom_out = InferenceWrapper(arch, mode="domain")(x)
    jax.block_until_ready(segm_out)
    jax.block_until_ready(dom_out)

    ref_segm, ref_dom = reference_forward(arch, x)
    assert segm_out.shape == (N, 3, H, W)
    assert dom_out.shape == (N, 2)
    assert jnp.allclose(segm_out, ref_segm, atol=1e-2, rtol=1e-2)
    assert jnp.allclose(dom_out, ref_dom, atol=1e-2, rtol=1e-2)

    print("KERNEL_OK")
</pallas_src>

<mosaic_0001>
module attributes {stable_mosaic.version = 11 : i64} {
  func.func @_dann_fused_kernel(%arg0: i32, %arg1: i32, %arg2: memref<1x128x36xbf16, #tpu.memory_space<vmem>>, %arg3: memref<36x32xbf16, #tpu.memory_space<vmem>>, %arg4: memref<1x32xf32, #tpu.memory_space<vmem>>, %arg5: memref<32x128xbf16, #tpu.memory_space<vmem>>, %arg6: memref<1x128xf32, #tpu.memory_space<vmem>>, %arg7: memref<32x128xf32, #tpu.memory_space<vmem>>, %arg8: memref<1x128xf32, #tpu.memory_space<vmem>>, %arg9: memref<1x128x128xf32, #tpu.memory_space<vmem>>, %arg10: memref<1x1x128xf32, #tpu.memory_space<vmem>>, %arg11: memref<1x32xf32, #tpu.memory_space<vmem>>) attributes {dimension_semantics = [#tpu.dimension_semantics<parallel>, #tpu.dimension_semantics<arbitrary>], iteration_bounds = array<i64: 2, 2>, scalar_prefetch = 0 : i64, scratch_operands = 1 : i64, tpu.core_type = #tpu.core_type<tc>, window_params = [{transform_indices = @transform_0, window_bounds = array<i64: 1, 128, 36>}, {pipeline_mode = #tpu.pipeline_mode<synchronous>, transform_indices = @transform_1, window_bounds = array<i64: 36, 32>}, {pipeline_mode = #tpu.pipeline_mode<synchronous>, transform_indices = @transform_2, window_bounds = array<i64: 1, 32>}, {pipeline_mode = #tpu.pipeline_mode<synchronous>, transform_indices = @transform_3, window_bounds = array<i64: 32, 128>}, {pipeline_mode = #tpu.pipeline_mode<synchronous>, transform_indices = @transform_4, window_bounds = array<i64: 1, 128>}, {pipeline_mode = #tpu.pipeline_mode<synchronous>, transform_indices = @transform_5, window_bounds = array<i64: 32, 128>}, {pipeline_mode = #tpu.pipeline_mode<synchronous>, transform_indices = @transform_6, window_bounds = array<i64: 1, 128>}, {transform_indices = @transform_7, window_bounds = array<i64: 1, 128, 128>}, {transform_indices = @transform_8, window_bounds = array<i64: 1, 1, 128>}]} {
    %c0_i32 = arith.constant 0 : i32
    %0 = arith.cmpi eq, %arg1, %c0_i32 : i32
    %1 = arith.extui %0 : i1 to i32
    %c0_i32_0 = arith.constant 0 : i32
    %2 = arith.cmpi ne, %1, %c0_i32_0 : i32
    scf.if %2 {
      %cst_22 = arith.constant 0.000000e+00 : f32
      %29 = vector.broadcast %cst_22 : f32 to vector<1x32xf32>
      %c0_23 = arith.constant 0 : index
      %c0_24 = arith.constant 0 : index
      %30 = vector.load %arg11[%c0_23, %c0_24] : memref<1x32xf32, #tpu.memory_space<vmem>>, vector<1x32xf32>
      tpu.vector_store %arg11[%c0_23, %c0_24], %29 {strides = array<i32>} : memref<1x32xf32, #tpu.memory_space<vmem>>, vector<1x32xf32>,
    } else {
    }
    %c0 = arith.constant 0 : index
    %c0_1 = arith.constant 0 : index
    %c0_2 = arith.constant 0 : index
    %3 = vector.load %arg2[%c0, %c0_1, %c0_2] : memref<1x128x36xbf16, #tpu.memory_space<vmem>>, vector<1x128x36xbf16>
    %4 = vector.shape_cast %3 : vector<1x128x36xbf16> to vector<128x36xbf16>
    %c0_3 = arith.constant 0 : index
    %c0_4 = arith.constant 0 : index
    %5 = vector.load %arg3[%c0_3, %c0_4] : memref<36x32xbf16, #tpu.memory_space<vmem>>, vector<36x32xbf16>
    %cst = arith.constant dense<0.000000e+00> : vector<128x32xf32>
    %6 = tpu.matmul %4, %5, %cst {dimension_numbers = #tpu.dot_dimension_numbers<[1], [0], [0], [1], [0, 0, 1, 1], [], []>} : vector<128x36xbf16>, vector<36x32xbf16>, vector<128x32xf32> -> vector<128x32xf32>
    %c0_5 = arith.constant 0 : index
    %c0_6 = arith.constant 0 : index
    %7 = vector.load %arg4[%c0_5, %c0_6] : memref<1x32xf32, #tpu.memory_space<vmem>>, vector<1x32xf32>
    %8 = vector.broadcast %7 : vector<1x32xf32> to vector<128x32xf32>
    %9 = arith.addf %6, %8 : vector<128x32xf32>
    %cst_7 = arith.constant 0.000000e+00 : f32
    %10 = vector.broadcast %cst_7 : f32 to vector<128x32xf32>
    %11 = arith.maximumf %9, %10 : vector<128x32xf32>
    %12 = arith.truncf %11 : vector<128x32xf32> to vector<128x32xbf16>
    %c0_8 = arith.constant 0 : index
    %c0_9 = arith.constant 0 : index
    %13 = vector.load %arg5[%c0_8, %c0_9] : memref<32x128xbf16, #tpu.memory_space<vmem>>, vector<32x128xbf16>
    %cst_10 = arith.constant dense<0.000000e+00> : vector<128x128xf32>
    %14 = tpu.matmul %12, %13, %cst_10 {dimension_numbers = #tpu.dot_dimension_numbers<[1], [0], [0], [1], [0, 0, 1, 1], [], []>} : vector<128x32xbf16>, vector<32x128xbf16>, vector<128x128xf32> -> vector<128x128xf32>
    %c0_11 = arith.constant 0 : index
    %c0_12 = arith.constant 0 : index
    %15 = vector.load %arg6[%c0_11, %c0_12] : memref<1x128xf32, #tpu.memory_space<vmem>>, vector<1x128xf32>
    %16 = vector.broadcast %15 : vector<1x128xf32> to vector<128x128xf32>
    %17 = arith.addf %14, %16 : vector<128x128xf32>
    %c0_13 = arith.constant 0 : index
    %c0_14 = arith.constant 0 : index
    %c0_15 = arith.constant 0 : index
    %18 = vector.load %arg9[%c0_13, %c0_14, %c0_15] : memref<1x128x128xf32, #tpu.memory_space<vmem>>, vector<1x128x128xf32>
    %19 = vector.shape_cast %18 : vector<1x128x128xf32> to vector<128x128xf32>
    %20 = vector.shape_cast %17 : vector<128x128xf32> to vector<1x128x128xf32>
    tpu.vector_store %arg9[%c0_13, %c0_14, %c0_15], %20 {strides = array<i32>} : memref<1x128x128xf32, #tpu.memory_space<vmem>>, vector<1x128x128xf32>,
    %c0_16 = arith.constant 0 : index
    %c0_17 = arith.constant 0 : index
    %21 = vector.load %arg11[%c0_16, %c0_17] : memref<1x32xf32, #tpu.memory_space<vmem>>, vector<1x32xf32>
    %cst_18 = arith.constant dense<0.000000e+00> : vector<32xf32>
    %22 = vector.multi_reduction <add>, %11, %cst_18 [0] : vector<128x32xf32> to vector<32xf32>
    %23 = vector.shape_cast %22 : vector<32xf32> to vector<1x32xf32>
    %24 = arith.addf %21, %23 : vector<1x32xf32>
    %c0_19 = arith.constant 0 : index
    %c0_20 = arith.constant 0 : index
    %25 = vector.load %arg11[%c0_19, %c0_20] : memref<1x32xf32, #tpu.memory_space<vmem>>, vector<1x32xf32>
    tpu.vector_store %arg11[%c0_19, %c0_20], %24 {strides = array<i32>} : memref<1x32xf32, #tpu.memory_space<vmem>>, vector<1x32xf32>,
    %c1_i32 = arith.constant 1 : i32
    %26 = arith.cmpi eq, %arg1, %c1_i32 : i32
    %27 = arith.extui %26 : i1 to i32
    %c0_i32_21 = arith.constant 0 : i32
    %28 = arith.cmpi ne, %27, %c0_i32_21 : i32
    scf.if %28 {
      %c0_22 = arith.constant 0 : index
      %c0_23 = arith.constant 0 : index
      %29 = vector.load %arg11[%c0_22, %c0_23] : memref<1x32xf32, #tpu.memory_space<vmem>>, vector<1x32xf32>
      %cst_24 = arith.constant 3.906250e-03 : f32
      %30 = vector.broadcast %cst_24 : f32 to vector<1x32xf32>
      %31 = arith.mulf %29, %30 : vector<1x32xf32>
      %c0_25 = arith.constant 0 : index
      %c0_26 = arith.constant 0 : index
      %32 = vector.load %arg7[%c0_25, %c0_26] : memref<32x128xf32, #tpu.memory_space<vmem>>, vector<32x128xf32>
      %cst_27 = arith.constant dense<0.000000e+00> : vector<1x128xf32>
      %33 = tpu.matmul %31, %32, %cst_27 {dimension_numbers = #tpu.dot_dimension_numbers<[1], [0], [0], [1], [0, 0, 1, 1], [], []>} : vector<1x32xf32>, vector<32x128xf32>, vector<1x128xf32> -> vector<1x128xf32>
      %c0_28 = arith.constant 0 : index
      %c0_29 = arith.constant 0 : index
      %34 = vector.load %arg8[%c0_28, %c0_29] : memref<1x128xf32, #tpu.memory_space<vmem>>, vector<1x128xf32>
      %35 = arith.addf %33, %34 : vector<1x128xf32>
      %c0_30 = arith.constant 0 : index
      %c0_31 = arith.constant 0 : index
      %c0_32 = arith.constant 0 : index
      %36 = vector.load %arg10[%c0_30, %c0_31, %c0_32] : memref<1x1x128xf32, #tpu.memory_space<vmem>>, vector<1x1x128xf32>
      %37 = vector.shape_cast %36 : vector<1x1x128xf32> to vector<1x128xf32>
      %38 = vector.shape_cast %35 : vector<1x128xf32> to vector<1x1x128xf32>
      tpu.vector_store %arg10[%c0_30, %c0_31, %c0_32], %38 {strides = array<i32>} : memref<1x1x128xf32, #tpu.memory_space<vmem>>, vector<1x1x128xf32>,
    } else {
    }
    return
  }
  func.func @transform_0(%arg0: i32, %arg1: i32) -> (i32, i32, i32) {
    %c0_i32 = arith.constant 0 : i32
    %c0_i32_0 = arith.constant 0 : i32
    return %arg0, %arg1, %c0_i32 : i32, i32, i32
  }
  func.func @transform_1(%arg0: i32, %arg1: i32) -> (i32, i32) {
    %c0_i32 = arith.constant 0 : i32
    %c0_i32_0 = arith.constant 0 : i32
    %c0_i32_1 = arith.constant 0 : i32
    return %c0_i32, %c0_i32_0 : i32, i32
  }
  func.func @transform_2(%arg0: i32, %arg1: i32) -> (i32, i32) {
    %c0_i32 = arith.constant 0 : i32
    %c0_i32_0 = arith.constant 0 : i32
    %c0_i32_1 = arith.constant 0 : i32
    return %c0_i32, %c0_i32_0 : i32, i32
  }
  func.func @transform_3(%arg0: i32, %arg1: i32) -> (i32, i32) {
    %c0_i32 = arith.constant 0 : i32
    %c0_i32_0 = arith.constant 0 : i32
    %c0_i32_1 = arith.constant 0 : i32
    return %c0_i32, %c0_i32_0 : i32, i32
  }
  func.func @transform_4(%arg0: i32, %arg1: i32) -> (i32, i32) {
    %c0_i32 = arith.constant 0 : i32
    %c0_i32_0 = arith.constant 0 : i32
    %c0_i32_1 = arith.constant 0 : i32
    return %c0_i32, %c0_i32_0 : i32, i32
  }
  func.func @transform_5(%arg0: i32, %arg1: i32) -> (i32, i32) {
    %c0_i32 = arith.constant 0 : i32
    %c0_i32_0 = arith.constant 0 : i32
    %c0_i32_1 = arith.constant 0 : i32
    return %c0_i32, %c0_i32_0 : i32, i32
  }
  func.func @transform_6(%arg0: i32, %arg1: i32) -> (i32, i32) {
    %c0_i32 = arith.constant 0 : i32
    %c0_i32_0 = arith.constant 0 : i32
    %c0_i32_1 = arith.constant 0 : i32
    return %c0_i32, %c0_i32_0 : i32, i32
  }
  func.func @transform_7(%arg0: i32, %arg1: i32) -> (i32, i32, i32) {
    %c0_i32 = arith.constant 0 : i32
    %c0_i32_0 = arith.constant 0 : i32
    return %arg0, %arg1, %c0_i32 : i32, i32, i32
  }
  func.func @transform_8(%arg0: i32, %arg1: i32) -> (i32, i32, i32) {
    %c0_i32 = arith.constant 0 : i32
    %c0_i32_0 = arith.constant 0 : i32
    %c0_i32_1 = arith.constant 0 : i32
    return %arg0, %c0_i32, %c0_i32_0 : i32, i32, i32
  }
}

</mosaic_0001>

<bundles_post_ra>
// kernel: tpu_custom_call.1
= control target key start
LH: loop header
LB: loop body
LE: loop exit
PB: predicated region body
PF: predicated region fallthrough
CT: control target
= control target key end

     0   :  { %s1831_s0 = inlined_call_operand.vmem [shape: bf16[2,256,36], index: 0, kind: input, shape index: {}]   ;;  %s1832_s1 = inlined_call_operand.vmem [shape: bf16[36,32], index: 1, kind: input, shape index: {}]   ;;  %s1833_s2 = inlined_call_operand.vmem [shape: f32[1,32], index: 2, kind: input, shape index: {}]   ;;  %s1834_s3 = inlined_call_operand.vmem [shape: bf16[32,128], index: 3, kind: input, shape index: {}]   ;;  %s1835_s4 = inlined_call_operand.vmem [shape: f32[1,128], index: 4, kind: input, shape index: {}]   ;;  %s1836_s5 = inlined_call_operand.vmem [shape: f32[32,128], index: 5, kind: input, shape index: {}]   ;;  %s1837_s6 = inlined_call_operand.vmem [shape: f32[1,128], index: 6, kind: input, shape index: {}]   ;;  %s1838_s7 = inlined_call_operand.hbm [shape: f32[2,256,128], index: 7, kind: output, shape index: {0}]   ;;  %s1839_s8 = inlined_call_operand.hbm [shape: f32[2,1,128], index: 8, kind: output, shape index: {1}]  }
   0x1   :  { %1849 = sst [smem:[#allocation18_spill]] %s1831_s0 }
   0x2   :  { %1850 = sst [smem:[#allocation19_spill]] %s1832_s1 }
   0x3   :  { %1851 = sst [smem:[#allocation20_spill]] %s1833_s2 }
   0x4   :  { %1852 = sst [smem:[#allocation21_spill]] %s1839_s8 }
   0x5   :  { %14 = vsyncpa [#allocation4], 0 }
   0x6   :  { %16 = vsyncpa [#allocation4 + $0x1], 0 }
   0x7   :  { %17 = vsyncpa [#allocation6], 0 }
   0x8   :  { %19 = vsyncpa [#allocation6 + $0x1], 0  ;;  %s1475_s27 = smov 0   ;;  %s1477_s28 = smov 0  }
   0x9   :  { %s1479_s29 = smov 0   ;;  %s1481_s30 = smov 0  }
   0xa   :  { %s1483_s9 = smov 0   ;;  %s1485_s10 = smov 0  }
   0xb   :  { %s1487_s11 = smov 0   ;;  %s1489_s12 = smov 0  }
   0xc   :  { %s1491_s13 = smov 0   ;;  %s1493_s14 = smov 0  }
   0xd   :  { %s1495_s15 = smov 0  }
   0xe LB: > { %1853 = sst [smem:[#allocation9_spill]] %s1388_s29  ;;  %s1015_s16 = sadd.s32 4294967295, %s1420_s15   ;;  %s1420_s15 = sphi %s1495_s15, %s25_s15   ;;  %s1416_s14 = sphi %s1493_s14, %s1881_s14   ;;  %s1412_s13 = sphi %s1491_s13, %s1880_s13   ;;  %s1408_s12 = sphi %s1489_s12, %s1879_s12   ;;  %s1404_s11 = sphi %s1487_s11, %s1878_s11   ;;  %s1400_s10 = sphi %s1485_s10, %s1877_s10   ;;  %s1396_s9 = sphi %s1483_s9, %s1885_s9   ;;  %s1392_s30 = sphi %s1481_s30, %s1884_s30   ;;  %s1388_s29 = sphi %s1479_s29, %s1875_s29   ;;  %s1384_s28 = sphi %s1477_s28, %s1883_s28   ;;  %s1380_s27 = sphi %s1475_s27, %s1882_s27  }
   0xf   : > { %1854 = sst [smem:[#allocation10_spill]] %s1392_s30  ;;  %s1016_s17 = sadd.s32 4294967294, %s1420_s15  }
  0x10   : > { %1855 = sst [smem:[#allocation11_spill]] %s1400_s10  ;;  %s34_s18 = sadd.s32 1, %s1412_s13 }
  0x11   : > { %1856 = sst [smem:[#allocation12_spill]] %s1412_s13  ;;  %s37_s19 = sadd.s32 1, %s1416_s14 }
  0x12   : > { %1857 = sst [smem:[#allocation13_spill]] %s1416_s14  ;;  %p35_p0 = scmp.ge.s32.totalorder %s34_s18, 2 }
  0x13   : > { %s200_s20 = sadd.s32 1, %s1400_s10  ;;  %p210_p1 = scmp.ne.s32.totalorder %s1400_s10, %s1396_s9 }
  0x14   : > { %p1537_p2 = scmp.eq.s32.totalorder %s1015_s16, 3  ;;  %s1887_s18 = smov (%p35_p0, %s34_s18), 0 }
  0x15   : > { %1859 = sst [smem:[#allocation14_spill]] %s1887_s18  ;;  %s1889_s19 = smov (!%p35_p0, %s37_s19), %s1416_s14 }
  0x16   : > { %s196_s22 = ssub.s32 %s1412_s13, %s1887_s18  ;;  %p1548_p3 = por %p1537_p2, %p210_p1 }
  0x17   : > { %p39_p4 = scmp.ge.s32.totalorder %s1889_s19, 2  ;;  %p216_p5 = scmp.ne.s32.totalorder %s1396_s9, %s1392_s30 }
  0x18   : > { %p1554_p6 = scmp.eq.s32.totalorder %s1016_s17, 3  ;;  %s226_s25 = sadd.s32 1, %s1388_s29 }
  0x19   : > { %s1891_s19 = smov (%p39_p4, %s1889_s19), 0  ;;  %p236_p8 = scmp.ne.s32.totalorder %s1388_s29, %s1384_s28 }
  0x1a   : > { %1862 = sst [smem:[#allocation15_spill]] %s1891_s19  ;;  %p1563_p7 = por %p1554_p6, %p216_p5 }
  0x1b   : > { %s195_s16 = ssub.s32 %s1416_s14, %s1891_s19  ;;  %p242_p9 = scmp.ne.s32.totalorder %s1384_s28, %s1380_s27 }
  0x1c   : > { %s197_s18 = sor.u32 %s196_s22, %s195_s16  ;;  %p224_p10 = scmp.eq.s32.totalorder %s195_s16, 0 }
  0x1d   : > { %p198_p11 = scmp.eq.s32.totalorder %s197_s18, 0  ;;  %p1575_p12 = por %p236_p8, %p1537_p2 }
  0x1e   : > { %s1580_s13 = scalar_select %p224_p10, %s1388_s29, %s226_s25  }
  0x1f   : > { %s1583_s30 = scalar_select %p198_p11, %s1400_s10, %s200_s20  }
  0x20   : > { %1865 = sst [smem:[#allocation16_spill]] %s1580_s13  ;;  %p1587_p13 = por %p242_p9, %p1554_p6 }
  0x21   : > { %1866 = sst [smem:[#allocation17_spill]] %s1583_s30  ;;  %p1019_p0 = scmp.ge.s32.totalorder %s1420_s15, 1 }
  0x22   : > { %p292_p1 = scmp.lt.s32.totalorder %s1420_s15, 5 }
  0x24   : > { %p293_p4 = pnand %p1019_p0, %p292_p1 }
  0x25   : > { %s1848_s18 = sand.u32 (!%p293_p4), 1, %s1396_s9   ;;  %s332_s21 = sand.u32 (!%p293_p4), 1, %s1384_s28  }
  0x26   : > { %296 = sbr.rel (%p293_p4) target bundleno = 614 (0x266), region = 48  ;;  %s1020_s20 = sshll.u32 (!%p293_p4), %s1848_s18, 7 }
  0x27   : > { %s1598_s22 = sshll.u32 (!%p293_p4), %s1404_s11, 4  ;;  %p335_p2 = scmp.lt.s32.totalorder (!%p293_p4), %s1408_s12, 1 }
  0x28   : > { %p337_p5 = scmp.lt.s32.totalorder (!%p293_p4), %s1598_s22, 31  ;;  %s1868_s0 = sld [smem:[#allocation18_spill]] (!%p293_p4) }
  0x29   : > { %s1609_s29 = scalar_lea.vmem (!%p293_p4), [#allocation3], %s1020_s20  ;;  %s1613_s18 = scalar_lea.vmem (!%p293_p4), [#allocation5], %s332_s21 }
  0x2a   : > { %p1024_p6 = scmp.ne.s32.totalorder (!%p293_p4), %s1404_s11, 0 }
  0x2d   : > { %s336_s24 = scalar_select %p335_p2, %s1408_s12, 1 }
  0x2e   : > { %s338_s25 = scalar_select %p337_p5, %s1598_s22, 31 }
  0x2f   : > { %s1022_s16 = sshll.u32 %s336_s24, 5  ;;  %349 = sbr.rel (%p1024_p6) target bundleno = 54 (0x36), region = 52  ;;  %vm350_vm0 = vcmask (!%p1024_p6), 253952   ;;  %v1422_v0 = vmov (!%p1024_p6), 0.0  }
  0x30   : > { %s340_s19 = sadd.s32 %s1022_s16, %s338_s25  ;;  %351 = vst.msk [vmem:[#allocation2] sm:$0x1] (!%p1024_p6), %vm350_vm0, %v1422_v0 }
  0x31   : > { %s1023_s14 = sshll.u32 %s340_s19, 2 }
  0x32   : > { %s1607_s13 = scalar_lea.vmem %s1868_s0, %s1023_s14 }
  0x36 PF: > { %s1869_s1 = sld [smem:[#allocation19_spill]]  ;;  %vm435_vm1 = vcmask 293888   ;;  %v1260_v4 = vld [vmem:[%s1607_s13] sm:$0xff]   ;;  %vm460_vm2 = vcmask 1041408   ;;  %v1261_v6 = vld [vmem:[%s1607_s13 + $0x8] sm:$0xff]   ;;  %v1262_v7 = vld [vmem:[%s1607_s13 + $0x10] sm:$0xff]  }
  0x37   : > { %1097 = vmatprep.mubr.msk.bf16.mxu0 %vm435_vm1, %v1260_v4  ;;  %v1263_v8 = vld [vmem:[%s1607_s13 + $0x18] sm:$0xff]   ;;  %v1264_v9 = vld [vmem:[%s1607_s13 + $0x20] sm:$0xff]   ;;  %v1265_v10 = vld [vmem:[%s1607_s13 + $0x28] sm:$0xff]   ;;  %s1870_s2 = sld [smem:[#allocation20_spill]]  ;;  %vm608_vm3 = vcmask 261120   ;;  %vm785_vm4 = vcmask 253952  }
  0x38   : > { %v1266_v11 = vld [vmem:[%s1607_s13 + $0x30] sm:$0xff]   ;;  %v1267_v12 = vld [vmem:[%s1607_s13 + $0x38] sm:$0xff]   ;;  %v1268_v13 = vld [vmem:[%s1834_s3] sm:$0xff]   ;;  %p1056_p8 = scmp.ne.s32.totalorder %s1404_s11, 1 }
  0x39   : > { %1113 = vmatprep.subr.bf16.mxu1 %v1268_v13  ;;  %v1269_v14 = vld [vmem:[%s1834_s3 + $0x8] sm:$0xff]   ;;  %vm1424_vm5 = vmmov (!%p1056_p8), 0  }
  0x3a   : > { %1114 = vmatpush3.bf16.msra.mxu1 %v1268_v13 }
  0x3b   : > { %1115 = vmatprep.subr.bf16.mxu1 %v1269_v14 }
  0x3c   : > { %v1257_v1 = vld [vmem:[%s1869_s1] sm:$0xff]   ;;  %v1258_v2 = vld [vmem:[%s1869_s1 + $0x8] sm:$0xff]   ;;  %v1259_v3 = vld [vmem:[%s1869_s1 + $0x10] ss:$0 sps:$4 sm:$0x33]  }
  0x3d   : > { %1091 = vmatprep.subr.bf16.mxu0 %v1257_v1  ;;  %v462_v5 = vsel %vm460_vm2, %v1259_v3, 0  ;;  %v1650_v15 = vld [vmem:[%s1870_s2] ss:$0 sm:$0xff] }
  0x3e   : > { %1092 = vmatpush3.bf16.msra.mxu0 %v1257_v1  ;;  %1116 = vmatpush3.bf16.msra.mxu1 %v1269_v14 }
  0x3f   : > { %1093 = vmatprep.subr.bf16.mxu0 %v1258_v2 }
  0x42   : > { %1094 = vmatpush3.bf16.msra.mxu0 %v1258_v2 }
  0x43   : > { %1150 = vmatprep.subr.msk.bf16.mxu0 %vm460_vm2, %v1259_v3 }
  0x46   : > { %1096 = vmatpush3.bf16.msra.mxu0 %v462_v5 }
  0x49   : > { %1098 = vmatmul.mubr.msk.bf16.vlgmr.msra.gmra.mrb[0].mxu0 %vm435_vm1, %v1261_v6 }
  0x4a   : > { %1101 = vmatprep.mubr.msk.bf16.mxu0 %vm435_vm1, %v1262_v7 }
  0x51   : > { %1102 = vmatmul.mubr.msk.bf16.gmra.mrb[4].mxu0 %vm435_vm1, %v1263_v8 }
  0x52   : > { %1105 = vmatprep.mubr.msk.bf16.mxu0 %vm435_vm1, %v1264_v9 }
  0x59   : > { %1106 = vmatmul.mubr.msk.bf16.gmra.mrb[8].mxu0 %vm435_vm1, %v1265_v10 }
  0x5a   : > { %1109 = vmatprep.mubr.msk.bf16.mxu0 %vm435_vm1, %v1266_v11 }
  0x61   : > { %1110 = vmatmul.mubr.msk.bf16.gmra.mrb[12].mxu0 %vm435_vm1, %v1267_v12 }
 0x11c   : > { %v1099_v16 = vpop.f32.mrb[0].mxu0 }
 0x11d   : > { %v507_v17 = vadd.f32 %v1099_v16, %v1650_v15  ;;  %v498_v18 = vpop.f32.mrb[1].mxu0 }
 0x11e   : > { %v499_v19 = vadd.f32 %v1650_v15, %v498_v18  ;;  %v1100_v20 = vpop.f32.mrb[2].mxu0 }
 0x11f   : > { %v510_v21 = vadd.f32 %v1100_v20, %v1650_v15  ;;  %v501_v22 = vpop.f32.mrb[3].mxu0  ;;  %v563_v25 = vmax.f32 %v507_v17, 0.0 }
 0x120   : > { %v561_v23 = vmax.f32 %v499_v19, 0.0  ;;  %v502_v24 = vadd.f32 %v1650_v15, %v501_v22 }
 0x121   : > { %v564_v26 = vmax.f32 %v510_v21, 0.0  ;;  %v750_v36 = vsel %vm608_vm3, %v563_v25, 0.0 }
 0x122   : > { %v562_v27 = vmax.f32 %v502_v24, 0.0  ;;  %v747_v29 = vsel %vm608_vm3, %v561_v23, 0.0 }
 0x123   : > { %v578_v28 = vpack.c.bf16 %v564_v26, %v563_v25  ;;  %v752_v42 = vsel %vm608_vm3, %v564_v26, 0.0 }
 0x124   : > { %v748_v30 = vsel %vm608_vm3, %v562_v27, 0.0  ;;  %v1103_v31 = vpop.f32.mrb[4].mxu0  ;;  %v577_v32 = vpack.c.bf16 %v562_v27, %v561_v23 }
 0x125   : > { %v749_v33 = vadd.f32 %v748_v30, %v747_v29  ;;  %v523_v34 = vadd.f32 %v1103_v31, %v1650_v15  ;;  %v514_v35 = vpop.f32.mrb[5].mxu0 }
 0x126   : > { %v515_v37 = vadd.f32 %v1650_v15, %v514_v35  ;;  %v1104_v38 = vpop.f32.mrb[6].mxu0  ;;  %1117 = vmatprep.mubr.msk.bf16.mxu1 %vm608_vm3, %v577_v32 }
 0x127   : > { %v751_v39 = vadd.f32 %v750_v36, %v749_v33  ;;  %v526_v40 = vadd.f32 %v1104_v38, %v1650_v15  ;;  %v517_v41 = vpop.f32.mrb[7].mxu0  ;;  %1118 = vmatmul.mubr.msk.bf16.vlgmr.msra.gmra.mrb[0].mxu1 %vm608_vm3, %v578_v28  ;;  %v567_v45 = vmax.f32 %v523_v34, 0.0 }
 0x128   : > { %v565_v43 = vmax.f32 %v515_v37, 0.0  ;;  %v518_v44 = vadd.f32 %v1650_v15, %v517_v41 }
 0x129   : > { %v753_v46 = vadd.f32 %v752_v42, %v751_v39  ;;  %v568_v47 = vmax.f32 %v526_v40, 0.0  ;;  %v758_v58 = vsel %vm608_vm3, %v567_v45, 0.0 }
 0x12a   : > { %v754_v48 = vsel %vm608_vm3, %v565_v43, 0.0  ;;  %v566_v49 = vmax.f32 %v518_v44, 0.0  ;;  %v746_v44 = vld [vmem:[#allocation2] sm:$0x1] }
 0x12b   : > { %v755_v50 = vadd.f32 %v754_v48, %v753_v46  ;;  %v580_v51 = vpack.c.bf16 %v568_v47, %v567_v45  ;;  %v760_v0 = vsel %vm608_vm3, %v568_v47, 0.0  ;;  %v1045_v47 = vld [vmem:[%s1835_s4] ss:$0 sm:$0xff] }
 0x12c   : > { %v579_v52 = vpack.c.bf16 %v566_v49, %v565_v43  ;;  %v756_v53 = vsel %vm608_vm3, %v566_v49, 0.0  ;;  %v1107_v54 = vpop.f32.mrb[8].mxu0 }
 0x12d   : > { %v757_v55 = vadd.f32 %v756_v53, %v755_v50  ;;  %v539_v56 = vadd.f32 %v1107_v54, %v1650_v15  ;;  %v530_v57 = vpop.f32.mrb[9].mxu0 }
 0x12e   : > { %v531_v59 = vadd.f32 %v1650_v15, %v530_v57  ;;  %v1108_v60 = vpop.f32.mrb[10].mxu0  ;;  %1121 = vmatprep.mubr.msk.bf16.mxu1 %vm608_vm3, %v579_v52 }
 0x12f   : > { %v759_v61 = vadd.f32 %v758_v58, %v757_v55  ;;  %v542_v62 = vadd.f32 %v1108_v60, %v1650_v15  ;;  %v533_v63 = vpop.f32.mrb[11].mxu0  ;;  %1122 = vmatmul.mubr.msk.bf16.gmra.mrb[4].mxu1 %vm608_vm3, %v580_v51  ;;  %v571_v3 = vmax.f32 %v539_v56, 0.0 }
 0x130   : > { %v569_v1 = vmax.f32 %v531_v59, 0.0  ;;  %v534_v2 = vadd.f32 %v1650_v15, %v533_v63 }
 0x131   : > { %v761_v4 = vadd.f32 %v760_v0, %v759_v61  ;;  %v572_v5 = vmax.f32 %v542_v62, 0.0  ;;  %v766_v17 = vsel %vm608_vm3, %v571_v3, 0.0 }
 0x132   : > { %v762_v6 = vsel %vm608_vm3, %v569_v1, 0.0  ;;  %v570_v7 = vmax.f32 %v534_v2, 0.0 }
 0x133   : > { %v763_v8 = vadd.f32 %v762_v6, %v761_v4  ;;  %v582_v9 = vpack.c.bf16 %v572_v5, %v571_v3  ;;  %v768_v23 = vsel %vm608_vm3, %v572_v5, 0.0 }
 0x134   : > { %v581_v10 = vpack.c.bf16 %v570_v7, %v569_v1  ;;  %v764_v11 = vsel %vm608_vm3, %v570_v7, 0.0  ;;  %v1111_v12 = vpop.f32.mrb[12].mxu0 }
 0x135   : > { %v765_v13 = vadd.f32 %v764_v11, %v763_v8  ;;  %v555_v14 = vadd.f32 %v1111_v12, %v1650_v15  ;;  %v546_v16 = vpop.f32.mrb[13].mxu0 }
 0x136   : > { %v547_v18 = vadd.f32 %v1650_v15, %v546_v16  ;;  %v1112_v19 = vpop.f32.mrb[14].mxu0  ;;  %1125 = vmatprep.mubr.msk.bf16.mxu1 %vm608_vm3, %v581_v10 }
 0x137   : > { %v767_v20 = vadd.f32 %v766_v17, %v765_v13  ;;  %v558_v21 = vadd.f32 %v1112_v19, %v1650_v15  ;;  %v549_v22 = vpop.f32.mrb[15].mxu0  ;;  %1126 = vmatmul.mubr.msk.bf16.gmra.mrb[8].mxu1 %vm608_vm3, %v582_v9  ;;  %v575_v26 = vmax.f32 %v555_v14, 0.0  ;;  %v793_v17 = vld [vmem:[%s1836_s5] sm:$0xff] (!%p1056_p8)  ;;  %v795_v19 = vld [vmem:[%s1836_s5 + $0x10] sm:$0xff] (!%p1056_p8) }
 0x138   : > { %v573_v24 = vmax.f32 %v547_v18, 0.0  ;;  %v550_v25 = vadd.f32 %v1650_v15, %v549_v22  ;;  %v794_v18 = vld [vmem:[%s1836_s5 + $0x8] sm:$0xff] (!%p1056_p8)  ;;  %v796_v22 = vld [vmem:[%s1836_s5 + $0x18] sm:$0xff] (!%p1056_p8) }
 0x139   : > { %v769_v27 = vadd.f32 %v768_v23, %v767_v20  ;;  %v576_v28 = vmax.f32 %v558_v21, 0.0  ;;  %v774_v36 = vsel %vm608_vm3, %v575_v26, 0.0  ;;  %v1423_v20 = vmov (!%p1056_p8), 0.0|0.0  }
 0x13a   : > { %v770_v29 = vsel %vm608_vm3, %v573_v24, 0.0  ;;  %v574_v30 = vmax.f32 %v550_v25, 0.0  ;;  %1144 = vmatprep.subr.bf16.mxu0 (!%p1056_p8), %v1423_v20  ;;  %v1145_v21 = vpack.c.bf16 (!%p1056_p8), %v794_v18, %v793_v17  ;;  %v1425_v23 = vmov (!%p1056_p8), 0.0  }
 0x13b   : > { %v771_v31 = vadd.f32 %v770_v29, %v769_v27  ;;  %v584_v32 = vpack.c.bf16 %v576_v28, %v575_v26  ;;  %v776_v15 = vsel %vm608_vm3, %v576_v28, 0.0  ;;  %1141 = vmatprep.mubr.msk.f32.mxu0 (!%p1056_p8), %vm1424_vm5, %v1425_v23  ;;  %v797_v27 = vld [vmem:[%s1837_s6] sm:$0x1] (!%p1056_p8) }
 0x13c   : > { %v583_v33 = vpack.c.bf16 %v574_v30, %v573_v24  ;;  %v772_v34 = vsel %vm608_vm3, %v574_v30, 0.0  ;;  %1146 = vmatpush3.bf16.msra.mxu0 (!%p1056_p8), %v1145_v21  ;;  %v1148_v24 = vpack.c.bf16 (!%p1056_p8), %v796_v22, %v795_v19 }
 0x13d   : > { %v773_v35 = vadd.f32 %v772_v34, %v771_v31  ;;  %1147 = vmatprep.subr.bf16.mxu0 (!%p1056_p8), %v1423_v20 }
 0x13e   : > { %1129 = vmatprep.mubr.msk.bf16.mxu1 %vm608_vm3, %v583_v33 }
 0x13f   : > { %v775_v37 = vadd.f32 %v774_v36, %v773_v35  ;;  %1130 = vmatmul.mubr.msk.bf16.gmra.mrb[12].mxu1 %vm608_vm3, %v584_v32 }
 0x140   : > { %1149 = vmatpush3.bf16.msra.mxu0 (!%p1056_p8), %v1148_v24 }
 0x141   : > { %v777_v38 = vadd.f32 %v776_v15, %v775_v37 }
 0x143   : > { %v778_v39 = vrot.slane %v777_v38, 4 }
 0x145   : > { %v779_v40 = vadd.f32 %v778_v39, %v777_v38 }
 0x147   : > { %v780_v41 = vrot.slane %v779_v40, 2 }
 0x149   : > { %v781_v42 = vadd.f32 %v780_v41, %v779_v40 }
 0x14b   : > { %v782_v43 = vrot.slane %v781_v42, 1 }
 0x14d   : > { %v783_v45 = vadd.f32 %v782_v43, %v781_v42 }
 0x14f   : > { %v784_v46 = vadd.f32 %v783_v45, %v746_v44 }
 0x151   : > { %786 = vst.msk [vmem:[#allocation2] sm:$0x1] %vm785_vm4, %v784_v46 }
 0x158   : > { %v791_v25 = vld [vmem:[#allocation2] sm:$0x1] (!%p1056_p8) }
 0x159   : > { %v792_v26 = vmul.f32 (!%p1056_p8), 0.00390625, %v791_v25 }
 0x15b   : > { %1142 = vmatmul.mubr.msk.f32.vlgmr.msra.gmra.mrb[0].mxu0 (!%p1056_p8), %vm608_vm3, %v792_v26 }
 0x1fa   : > { %v1119_v48 = vpop.f32.mrb[0].mxu1 }
 0x1fb   : > { %v676_v49 = vadd.f32 %v1119_v48, %v1045_v47  ;;  %v667_v50 = vpop.f32.mrb[1].mxu1 }
 0x1fc   : > { %v668_v51 = vadd.f32 %v1045_v47, %v667_v50  ;;  %v1120_v52 = vpop.f32.mrb[2].mxu1 }
 0x1fd   : > { %732 = vst [vmem:[%s1609_s29 + $0x10] sm:$0xff] %v676_v49  ;;  %v679_v53 = vadd.f32 %v1120_v52, %v1045_v47  ;;  %v670_v54 = vpop.f32.mrb[3].mxu1 }
 0x1fe   : > { %730 = vst [vmem:[%s1609_s29] sm:$0xff] %v668_v51  ;;  %v671_v55 = vadd.f32 %v1045_v47, %v670_v54 }
 0x1ff   : > { %733 = vst [vmem:[%s1609_s29 + $0x18] sm:$0xff] %v679_v53 }
 0x200   : > { %731 = vst [vmem:[%s1609_s29 + $0x8] sm:$0xff] %v671_v55 }
 0x202   : > { %v1123_v56 = vpop.f32.mrb[4].mxu1 }
 0x203   : > { %v692_v57 = vadd.f32 %v1123_v56, %v1045_v47  ;;  %v683_v58 = vpop.f32.mrb[5].mxu1 }
 0x204   : > { %v684_v59 = vadd.f32 %v1045_v47, %v683_v58  ;;  %v1124_v60 = vpop.f32.mrb[6].mxu1 }
 0x205   : > { %736 = vst [vmem:[%s1609_s29 + $0x30] sm:$0xff] %v692_v57  ;;  %v695_v61 = vadd.f32 %v1124_v60, %v1045_v47  ;;  %v686_v62 = vpop.f32.mrb[7].mxu1 }
 0x206   : > { %734 = vst [vmem:[%s1609_s29 + $0x20] sm:$0xff] %v684_v59  ;;  %v687_v63 = vadd.f32 %v1045_v47, %v686_v62 }
 0x207   : > { %737 = vst [vmem:[%s1609_s29 + $0x38] sm:$0xff] %v695_v61 }
 0x208   : > { %735 = vst [vmem:[%s1609_s29 + $0x28] sm:$0xff] %v687_v63 }
 0x20a   : > { %v1127_v0 = vpop.f32.mrb[8].mxu1 }
 0x20b   : > { %v708_v1 = vadd.f32 %v1127_v0, %v1045_v47  ;;  %v699_v2 = vpop.f32.mrb[9].mxu1 }
 0x20c   : > { %v700_v3 = vadd.f32 %v1045_v47, %v699_v2  ;;  %v1128_v4 = vpop.f32.mrb[10].mxu1 }
 0x20d   : > { %740 = vst [vmem:[%s1609_s29 + $0x50] sm:$0xff] %v708_v1  ;;  %v711_v5 = vadd.f32 %v1128_v4, %v1045_v47  ;;  %v702_v6 = vpop.f32.mrb[11].mxu1 }
 0x20e   : > { %738 = vst [vmem:[%s1609_s29 + $0x40] sm:$0xff] %v700_v3  ;;  %v703_v7 = vadd.f32 %v1045_v47, %v702_v6 }
 0x20f   : > { %741 = vst [vmem:[%s1609_s29 + $0x58] sm:$0xff] %v711_v5 }
 0x210   : > { %739 = vst [vmem:[%s1609_s29 + $0x48] sm:$0xff] %v703_v7 }
 0x212   : > { %v1131_v8 = vpop.f32.mrb[12].mxu1  ;;  %790 = sbr.rel (%p1056_p8) target bundleno = 562 (0x232), region = 56 }
 0x213   : > { %v724_v9 = vadd.f32 %v1131_v8, %v1045_v47  ;;  %v715_v10 = vpop.f32.mrb[13].mxu1 }
 0x214   : > { %v716_v11 = vadd.f32 %v1045_v47, %v715_v10  ;;  %v1132_v12 = vpop.f32.mrb[14].mxu1 }
 0x215   : > { %744 = vst [vmem:[%s1609_s29 + $0x70] sm:$0xff] %v724_v9  ;;  %v727_v13 = vadd.f32 %v1132_v12, %v1045_v47  ;;  %v718_v14 = vpop.f32.mrb[15].mxu1 }
 0x216   : > { %742 = vst [vmem:[%s1609_s29 + $0x60] sm:$0xff] %v716_v11  ;;  %v719_v16 = vadd.f32 %v1045_v47, %v718_v14 }
 0x217   : > { %745 = vst [vmem:[%s1609_s29 + $0x78] sm:$0xff] %v727_v13 }
 0x218   : > { %743 = vst [vmem:[%s1609_s29 + $0x68] sm:$0xff] %v719_v16 }
 0x22e   : > { %v867_v28 = vpop.f32.mrb[0].mxu0 }
 0x22f   : > { %v868_v29 = vadd.f32 %v867_v28, %v797_v27  ;;  %v1143_v30 = vpop.f32.mrb[1].mxu0 }
 0x231   : > { %871 = vst [vmem:[%s1613_s18] sm:$0x1] %v868_v29 }
 0x232 PF: > { %s1060_s19 = sshll.u32 %s1408_s12, 5  ;;  %s892_s16 = sshll.u32 %s1609_s29, 4  ;;  %s1732_s16 = int_to_ptr.vmem [resolvable:$true] %s892_s16 }
 0x233   : > { %s889_s20 = sadd.s32 %s1060_s19, %s1598_s22  ;;  %s1871_s13 = sand.u32 1, %s1396_s9  }
 0x234   : > { %s1061_s24 = sshll.u32 %s889_s20, 7  ;;  %s1741_s11 = scalar_lea.sflag [#allocation4], %s1871_s13 }
 0x235   : > { %s1737_s10 = scalar_lea.hbm %s1838_s7, %s1061_s24  ;;  %s1270_s14 = scalar_lea.vmem %s1732_s16, 2048 }
 0x236   : > { %p1271_p9 = scmp.ne.s32.totalorder %s1732_s16, %s1270_s14  ;;  %s1426_s29 = smov [#allocation3]  }
 0x237   : > { %s1274_s22 = sshll.u32 %s1426_s29, 4  ;;  %s1275_s22 = int_to_ptr.vmem [resolvable:$false] %s1274_s22 }
 0x238   : > { %p1272_p10 = pnand %p1271_p9, %p1548_p3  ;;  %s1276_s19 = scalar_lea.vmem %s1275_s22, 4096 }
 0x239   : > { %p1277_p0 = scmp.lt.s32.totalorder %s1732_s16, %s1275_s22  ;;  %p1278_p1 = scmp.lt.s32.totalorder %s1276_s19, %s1270_s14 }
 0x23a   : > { %p1273_p11 = pneg %p1272_p10 }
 0x23b   : > { %p1279_p4 = por %p1278_p1, %p1277_p0 }
 0x23d   : > { %p1280_p2 = pnand %p1279_p4, %p1273_p11 }
 0x23f   : > { %1283 = shalt.err (!%p1280_p2)
}
 0x240   : > { %s1284_s20 = scalar_lea.hbm %s1737_s10, 2048  ;;  %s1288_s30 = scalar_lea.hbm %s1838_s7, 8192 }
 0x241   : > { %p1285_p5 = scmp.ne.s32.totalorder %s1737_s10, %s1284_s20  ;;  %p1289_p9 = scmp.lt.u32.totalorder %s1737_s10, %s1838_s7 }
 0x242   : > { %p1290_p10 = scmp.lt.u32.totalorder %s1288_s30, %s1284_s20  ;;  %p1292_p0 = scmp.lt.u32.totalorder %s1284_s20, %s1737_s10 }
 0x243   : > { %p1286_p6 = pnand %p1285_p5, %p1548_p3 }
 0x244   : > { %p1291_p11 = por %p1290_p10, %p1289_p9 }
 0x245   : > { %p1287_p8 = pneg %p1286_p6 }
 0x246   : > { %p1293_p1 = por %p1292_p0, %p1291_p11 }
 0x248   : > { %p1294_p4 = pnand %p1293_p1, %p1287_p8 }
 0x24a   : > { %1297 = shalt.err (!%p1294_p4)
}
 0x24b   : > { %s1427_s14 = smov 128   ;;  %s1428_s22 = smov 8  }
 0x24c   : > { %1151 = dma.vmem_to_hbm [thread:$0]  (%p1548_p3), %s1732_s16, 2048, %s1737_s10, %s1741_s11, %s1427_s14, %s1427_s14, %s1428_s22  }
 0x24d   : > { %s1062_s19 = sshll.u32 %s1408_s12, 4  ;;  %s908_s24 = sshll.u32 %s1613_s18, 4  ;;  %s909_s24 = int_to_ptr.vmem [resolvable:$true] %s908_s24 }
 0x24e   : > { %s1872_s20 = sld [smem:[#allocation21_spill]]  ;;  %s878_s29 = scalar_lea.sflag [#allocation6], %s332_s21 }
 0x24f   : > { %s1298_s0 = scalar_lea.vmem %s909_s24, 16  ;;  %s1429_s1 = smov [#allocation5]  }
 0x250   : > { %p1299_p2 = scmp.ne.s32.totalorder %s909_s24, %s1298_s0  ;;  %s1302_s2 = sshll.u32 %s1429_s1, 4  ;;  %s1303_s2 = int_to_ptr.vmem [resolvable:$false] %s1302_s2 }
 0x251   : > { %s1304_s23 = scalar_lea.vmem %s1303_s2, 32  ;;  %p1305_p3 = scmp.lt.s32.totalorder %s909_s24, %s1303_s2 }
 0x252   : > { %p1300_p5 = pnand %p1299_p2, %p1575_p12  ;;  %p1306_p8 = scmp.lt.s32.totalorder %s1304_s23, %s1298_s0 }
 0x254   : > { %s1770_s13 = scalar_lea.hbm %s1872_s20, %s1062_s19  ;;  %p1301_p6 = pneg %p1300_p5 }
 0x255   : > { %p1307_p9 = por %p1306_p8, %p1305_p3 }
 0x257   : > { %p1308_p10 = pnand %p1307_p9, %p1301_p6 }
 0x259   : > { %1311 = shalt.err (!%p1308_p10)
}
 0x25a   : > { %s1312_s12 = scalar_lea.hbm %s1770_s13, 16  ;;  %s1316_s1 = scalar_lea.hbm %s1872_s20, 32 }
 0x25b   : > { %p1313_p11 = scmp.ne.s32.totalorder %s1770_s13, %s1312_s12  ;;  %p1317_p4 = scmp.lt.u32.totalorder %s1770_s13, %s1872_s20 }
 0x25c   : > { %p1318_p2 = scmp.lt.u32.totalorder %s1316_s1, %s1312_s12  ;;  %p1320_p6 = scmp.lt.u32.totalorder %s1312_s12, %s1770_s13 }
 0x25d   : > { %p1314_p0 = pnand %p1313_p11, %p1575_p12 }
 0x25e   : > { %p1319_p5 = por %p1318_p2, %p1317_p4 }
 0x25f   : > { %p1315_p1 = pneg %p1314_p0 }
 0x260   : > { %p1321_p3 = por %p1320_p6, %p1319_p5 }
 0x262   : > { %p1322_p8 = pnand %p1321_p3, %p1315_p1 }
 0x264   : > { %1325 = shalt.err (!%p1322_p8)
}
 0x265   : > { %1152 = dma.vmem_to_hbm [thread:$0]  (%p1575_p12), %s909_s24, 16, %s1770_s13, %s878_s29  }
 0x266 PF: > { %s1873_s0 = sld [smem:[#allocation10_spill]]  ;;  %p1162_p9 = scmp.ge.s32.totalorder %s1420_s15, 2 }
 0x268   : > { %p1156_p10 = pnand %p1162_p9, %p1563_p7 }
 0x26c   : > { %s920_s10 = sand.u32 1, %s1873_s0  }
 0x26d   : > { %s921_s11 = scalar_lea.sflag [#allocation4], %s920_s10 }
 0x26e   : > { %1371 = dma.done.wait (!%p1156_p10), %s921_s11, 2048  }
 0x26f   : > { %1373 = vsyncadd (!%p1156_p10), %s921_s11, 4294965248  ;;  %s929_s14 = sand.u32 1, %s1380_s27   ;;  %p1159_p11 = pnand %p1162_p9, %p1587_p13 }
 0x270   : > { %s930_s22 = scalar_lea.sflag [#allocation6], %s929_s14 }
 0x271   : > { %1375 = dma.done.wait (!%p1159_p11), %s930_s22, 16  }
 0x272   : > { %1377 = vsyncadd (!%p1159_p11), %s930_s22, 4294967280  ;;  %s25_s15 = sadd.s32 1, %s1420_s15   ;;  %s1874_s17 = sld [smem:[#allocation9_spill]] }
 0x273   : > { %p22_p12 = scmp.ge.s32.totalorder %s25_s15, 6   ;;  %s1875_s29 = sld [smem:[#allocation16_spill]] }
 0x274   : > { %s1876_s26 = sld [smem:[#allocation11_spill]]  ;;  %s1877_s10 = sld [smem:[#allocation17_spill]] }
 0x275   : > { %s1878_s11 = sld [smem:[#allocation12_spill]]  ;;  %s1879_s12 = sld [smem:[#allocation13_spill]] }
 0x276   : > { %s1880_s13 = sld [smem:[#allocation14_spill]]  ;;  %s1881_s14 = sld [smem:[#allocation15_spill]] }
 0x277   : > { %s1882_s27 = smov %s1384_s28  ;;  %s1884_s30 = smov %s1396_s9 }
 0x278   : > { %s1883_s28 = smov %s1874_s17  ;;  %24 = sbr.rel (!%p22_p12) target bundleno = 14 (0xe), region = 108 }
 0x27a   : > { %s1885_s9 = smov %s1876_s26 }
 0x27f   :  { %934 = vsyncpa [#allocation4], 1 }
 0x280   :  { %936 = vsyncpa [#allocation4 + $0x1], 1 }
 0x281   :  { %937 = vsyncpa [#allocation6], 1 }
 0x282   :  { %939 = vsyncpa [#allocation6 + $0x1], 1 }

</bundles_post_ra>
